<compile_context>
chip_gen: v5e
topology: v5e:2x2
jax: 0.10.0
libtpu: 0.0.40
codegen_flags: <defaults>
</compile_context>

<pallas_src>
import numpy as np
import jax
import jax.numpy as jnp
from jax.experimental import pallas as pl
from jax.experimental.pallas import tpu as pltpu


# ----------------------------------------------------------------------------
# Shape helpers
# ----------------------------------------------------------------------------
def _resolve_shape(numel, shape):
    """Resolve a torch-style view shape (supports a single -1)."""
    shape = list(shape)
    neg = [i for i, s in enumerate(shape) if s == -1]
    assert len(neg) <= 1, "only one -1 allowed in view shape"
    if neg:
        known = 1
        for s in shape:
            if s != -1:
                known *= int(s)
        assert known > 0 and numel % known == 0, "invalid view shape"
        shape[neg[0]] = numel // known
    total = 1
    for s in shape:
        total *= int(s)
    assert total == numel, "view shape must preserve numel"
    return tuple(int(s) for s in shape)


def _pick_slab(numel):
    """Pick a lane-dense (rows, lanes) factorization of the flat length, or None."""
    for lanes in (4096, 2048, 1024, 512, 256, 128):
        if numel % lanes == 0:
            return numel // lanes, lanes
    return None


def _num_dma_chunks(rows, lanes, itemsize):
    """Split large copies into a few concurrent DMAs; small copies use one."""
    total_bytes = rows * lanes * itemsize
    min_chunk_bytes = 1 << 20  # 1 MiB per DMA chunk minimum
    for c in (8, 4, 2):
        if rows % c == 0 and total_bytes // c >= min_chunk_bytes:
            return c
    return 1


# ----------------------------------------------------------------------------
# Pallas HBM->HBM DMA copy (optional path — only when a real copy is wanted)
# ----------------------------------------------------------------------------
def _make_dma_copy_kernel(n_chunks, chunk_rows):
    def kernel(x_hbm, o_hbm, sems):
        # Issue all chunk DMAs, then wait on all of them: HBM -> HBM, no VMEM
        # staging, no vreg load/store pass.
        copies = []
        for c in range(n_chunks):
            src = x_hbm.at[pl.ds(c * chunk_rows, chunk_rows)]
            dst = o_hbm.at[pl.ds(c * chunk_rows, chunk_rows)]
            cp = pltpu.make_async_copy(src, dst, sems.at[c])
            cp.start()
            copies.append(cp)
        for cp in copies:
            cp.wait()
    return kernel


def _pallas_hbm_copy(slab):
    rows, lanes = slab.shape
    itemsize = jnp.dtype(slab.dtype).itemsize
    n_chunks = _num_dma_chunks(rows, lanes, itemsize)
    chunk_rows = rows // n_chunks
    kernel = _make_dma_copy_kernel(n_chunks, chunk_rows)
    return pl.pallas_call(
        kernel,
        out_shape=jax.ShapeDtypeStruct((rows, lanes), slab.dtype),
        in_specs=[pl.BlockSpec(memory_space=pl.ANY)],   # raw HBM ref
        out_specs=pl.BlockSpec(memory_space=pl.ANY),    # raw HBM ref
        scratch_shapes=[pltpu.SemaphoreType.DMA((n_chunks,))],
    )(slab)


# ----------------------------------------------------------------------------
# Public wrapper: equivalent of ViewLayer(shape)(x) == x.view(shape)
# ----------------------------------------------------------------------------
def view_layer(x, shape, use_pallas_copy=False):
    """Row-major view.  Default path is pure metadata (zero HBM traffic)."""
    numel = int(x.size)
    target = _resolve_shape(numel, shape)

    if not use_pallas_copy or numel == 0:
        # Optimal path: a contiguous view is metadata-only.
        return jnp.reshape(x, target)

    slab_dims = _pick_slab(numel)
    if slab_dims is None:
        # Ragged flat length: no lane-dense slab; a copy buys nothing here, so
        # return the metadata-only reshape instead of paying HBM traffic.
        return jnp.reshape(x, target)

    rows, lanes = slab_dims
    slab = jnp.reshape(x, (rows, lanes))      # metadata-only (row-major)
    out_slab = _pallas_hbm_copy(slab)         # single/chunked HBM->HBM DMA
    return jnp.reshape(out_slab, target)      # metadata-only


if __name__ == "__main__":
    key = jax.random.PRNGKey(0)

    # Small input consistent with a typical conv feature map (NCHW).
    x = jax.random.normal(key, (2, 4, 16, 16), dtype=jnp.float32)
    ref = jnp.reshape(x, (2, 4, 16 * 16))

    # Default (optimal) path: pure metadata view, zero HBM traffic.
    y = jax.block_until_ready(view_layer(x, (2, 4, -1)))
    assert y.shape == ref.shape and y.dtype == ref.dtype
    np.testing.assert_array_equal(np.asarray(y), np.asarray(ref))

    # Pallas HBM->HBM DMA copy path (for fusion / benchmarking use cases).
    y_dma = jax.block_until_ready(view_layer(x, (2, 4, -1), use_pallas_copy=True))
    assert y_dma.shape == ref.shape and y_dma.dtype == ref.dtype
    np.testing.assert_array_equal(np.asarray(y_dma), np.asarray(ref))

    # Ragged flat length exercises the metadata-only fallback.
    x2 = jax.random.normal(jax.random.PRNGKey(1), (3, 5, 7), dtype=jnp.float32)
    y2 = jax.block_until_ready(view_layer(x2, (-1, 21)))
    np.testing.assert_array_equal(np.asarray(y2), np.asarray(jnp.reshape(x2, (5, 21))))

    print("KERNEL_OK")
</pallas_src>

<mosaic_0001>
module attributes {stable_mosaic.version = 11 : i64} {
  func.func @kernel(%arg0: memref<1x2048xf32, #tpu.memory_space<any>>, %arg1: memref<1x2048xf32, #tpu.memory_space<any>>, %arg2: memref<1x!tpu.dma_semaphore, #tpu.memory_space<semaphore_mem>>) attributes {dimension_semantics = [], scalar_prefetch = 0 : i64, scratch_operands = 1 : i64, tpu.core_type = #tpu.core_type<tc>} {
    %c0_i32 = arith.constant 0 : i32
    %c0_i32_0 = arith.constant 0 : i32
    %c0_i32_1 = arith.constant 0 : i32
    %0 = tpu.memref_slice %arg0[%c0_i32_0, %c0_i32_1] : memref<1x2048xf32, #tpu.memory_space<any>> -> memref<1x2048xf32, #tpu.memory_space<any>>
    %c0_i32_2 = arith.constant 0 : i32
    %c0_i32_3 = arith.constant 0 : i32
    %1 = tpu.memref_slice %arg1[%c0_i32_2, %c0_i32_3] : memref<1x2048xf32, #tpu.memory_space<any>> -> memref<1x2048xf32, #tpu.memory_space<any>>
    %2 = tpu.memref_slice %arg2[%c0_i32] : memref<1x!tpu.dma_semaphore, #tpu.memory_space<semaphore_mem>> -> memref<1x!tpu.dma_semaphore, #tpu.memory_space<semaphore_mem>>
    %3 = tpu.memref_squeeze %2 : memref<1x!tpu.dma_semaphore, #tpu.memory_space<semaphore_mem>> -> memref<!tpu.dma_semaphore, #tpu.memory_space<semaphore_mem>>
    tpu.enqueue_dma source(%0 : memref<1x2048xf32, #tpu.memory_space<any>>) target(%1 : memref<1x2048xf32, #tpu.memory_space<any>>) target_semaphore(%3 : memref<!tpu.dma_semaphore, #tpu.memory_space<semaphore_mem>>)
    %c0_i32_4 = arith.constant 0 : i32
    %c0_i32_5 = arith.constant 0 : i32
    %c0_i32_6 = arith.constant 0 : i32
    %4 = tpu.memref_slice %arg0[%c0_i32_5, %c0_i32_6] : memref<1x2048xf32, #tpu.memory_space<any>> -> memref<1x2048xf32, #tpu.memory_space<any>>
    %c0_i32_7 = arith.constant 0 : i32
    %c0_i32_8 = arith.constant 0 : i32
    %5 = tpu.memref_slice %arg1[%c0_i32_7, %c0_i32_8] : memref<1x2048xf32, #tpu.memory_space<any>> -> memref<1x2048xf32, #tpu.memory_space<any>>
    %6 = tpu.memref_slice %arg2[%c0_i32_4] : memref<1x!tpu.dma_semaphore, #tpu.memory_space<semaphore_mem>> -> memref<1x!tpu.dma_semaphore, #tpu.memory_space<semaphore_mem>>
    %7 = tpu.memref_squeeze %6 : memref<1x!tpu.dma_semaphore, #tpu.memory_space<semaphore_mem>> -> memref<!tpu.dma_semaphore, #tpu.memory_space<semaphore_mem>>
    tpu.wait_dma2 semaphore(%7 : memref<!tpu.dma_semaphore, #tpu.memory_space<semaphore_mem>>) src(%4 : memref<1x2048xf32, #tpu.memory_space<any>>) dst(%5 : memref<1x2048xf32, #tpu.memory_space<any>>)
    return
  }
}

</mosaic_0001>

<bundles_post_ra>
// kernel: tpu_custom_call.1
= control target key start
LH: loop header
LB: loop body
LE: loop exit
PB: predicated region body
PF: predicated region fallthrough
CT: control target
= control target key end

     0   :  { %s32_s12 = smov [#allocation2]   ;;  %s33_s13 = smov [#allocation3]   ;;  %s51_s0 = inlined_call_operand.hbm [shape: f32[1,2048], index: 0, kind: input, shape index: {}]   ;;  %s52_s1 = inlined_call_operand.hbm [shape: f32[1,2048], index: 1, kind: output, shape index: {}]  }
   0x1   :  { %s10_s8 = sshll.u32 %s51_s0, 4  ;;  %s12_s11 = sshll.u32 %s52_s1, 4  ;;  %s11_s8 = int_to_ptr.hbm [resolvable:$true] %s10_s8  ;;  %s13_s11 = int_to_ptr.hbm [resolvable:$true] %s12_s11 }
   0x2   :  { %s34_s14 = smov 0  }
   0x3   :  { %16 = dma.general %s11_s8, 256, %s13_s11, %s32_s12, %s33_s13, [#allocation4], %s34_s14, 0  }
   0x4   :  { %30 = dma.done.wait [#allocation2], 256 }
   0x5   :  { %31 = vsyncadd [#allocation2], 4294967040 }
   0x6   :  { %20 = vsyncmov [#allocation2] }
   0x9   :  { %s21_s15 = vpop.sfrf %20 }
   0xa   :  { %p26_p0 = scmp.ne.s32.totalorder %s21_s15, 0 }
   0xc   :  { %25 = shalt.err (%p26_p0)  }

</bundles_post_ra>
